<compile_context>
chip_gen: v5e
topology: v5e:2x2
jax: 0.10.0
libtpu: 0.0.40
codegen_flags: <defaults>
</compile_context>

<pallas_src>
import functools

import jax
import jax.numpy as jnp
from jax.experimental import pallas as pl
from jax.experimental.pallas import tpu as pltpu


def transition_mlp_kernel(s_ref, a_ref, w1s_ref, w1a_ref, b1_ref,
                          w2_ref, b2_ref, w3_ref, b3_ref, out_ref):
    # s:  [TB, state_dim]       a:  [TB, action_dim]
    # w1s:[state_dim, H]        w1a:[action_dim, H]     b1:[1, H]   (b* kept f32)
    # w2: [H, H]                b2: [1, H]
    # w3: [H, out_pad]          b3: [1, out_pad]
    # out:[TB, out_pad]  (lane-dense, padded to a multiple of 128)
    #
    # Fused concat: x @ W1 == state @ W1[:sd] + action @ W1[sd:]
    h1 = (jnp.dot(s_ref[...], w1s_ref[...], preferred_element_type=jnp.float32)
          + jnp.dot(a_ref[...], w1a_ref[...], preferred_element_type=jnp.float32)
          + b1_ref[...])
    h1 = jnp.maximum(h1, 0.0)

    h2 = jnp.dot(h1.astype(w2_ref.dtype), w2_ref[...],
                 preferred_element_type=jnp.float32) + b2_ref[...]
    h2 = jnp.maximum(h2, 0.0)

    out = jnp.dot(h2.astype(w3_ref.dtype), w3_ref[...],
                  preferred_element_type=jnp.float32) + b3_ref[...]
    out_ref[...] = out.astype(out_ref.dtype)


@functools.partial(jax.jit, static_argnames=("tile_b", "compute_dtype"))
def transition_model_forward(state, action, params, *, tile_b=256,
                             compute_dtype=jnp.float32):
    """state: [B, state_dim], action: [B, action_dim] -> (next_state_pred, reward_pred)."""
    w1, b1, w2, b2, w3, b3 = params
    B, state_dim = state.shape
    action_dim = action.shape[1]
    out_dim = w3.shape[1]  # state_dim + 1

    # --- fuse the concat: split the first weight matrix by input feature group ---
    w1_s = w1[:state_dim, :]
    w1_a = w1[state_dim:, :]

    # --- lane-dense output: pad out columns to a multiple of 128 with zeros ---
    out_pad = pl.cdiv(out_dim, 128) * 128
    w3_p = jnp.pad(w3, ((0, 0), (0, out_pad - out_dim)))
    b3_p = jnp.pad(b3, ((0, 0), (0, out_pad - out_dim)))

    # --- batch tiling: TB a multiple of 8 (f32 sublane); pad B up to a tile multiple ---
    tb = max(8, (min(tile_b, max(B, 8)) // 8) * 8)
    Bp = pl.cdiv(B, tb) * tb
    state_p = jnp.pad(state, ((0, Bp - B), (0, 0)))
    action_p = jnp.pad(action, ((0, Bp - B), (0, 0)))

    # --- optional bf16 operands (accumulation stays f32; bias/ReLU stay f32) ---
    cd = compute_dtype
    state_p = state_p.astype(cd)
    action_p = action_p.astype(cd)
    w1_s, w1_a, w2_c, w3_c = (t.astype(cd) for t in (w1_s, w1_a, w2, w3_p))
    b1_c, b2_c, b3_c = (t.astype(jnp.float32) for t in (b1, b2, b3_p))

    grid = (Bp // tb,)
    batch_block = lambda last: pl.BlockSpec((tb, last), lambda i: (i, 0))
    resident = lambda arr: pl.BlockSpec(arr.shape, lambda i: (0, 0))  # weights stay in VMEM

    out = pl.pallas_call(
        transition_mlp_kernel,
        out_shape=jax.ShapeDtypeStruct((Bp, out_pad), jnp.float32),
        grid=grid,
        in_specs=[
            batch_block(state_dim),        # state tile
            batch_block(action_dim),       # action tile
            resident(w1_s), resident(w1_a), resident(b1_c),
            resident(w2_c), resident(b2_c),
            resident(w3_c), resident(b3_c),
        ],
        out_specs=batch_block(out_pad),
        compiler_params=pltpu.CompilerParams(
            dimension_semantics=("parallel",),  # v7x: shard batch tiles across both TCs
        ),
    )(state_p, action_p, w1_s, w1_a, b1_c, w2_c, b2_c, w3_c, b3_c)

    out = out[:B, :out_dim]
    next_state_pred = out[:, :state_dim]
    reward_pred = out[:, state_dim:]
    return next_state_pred, reward_pred


def init_params(key, state_dim, action_dim, hidden_size=128):
    """Deterministic parameter init (same shapes/semantics as the PyTorch module)."""
    input_dim = state_dim + action_dim
    out_dim = state_dim + 1
    ks = jax.random.split(key, 6)

    def linear(kw, kb, fan_in, fan_out):
        bound = 1.0 / jnp.sqrt(fan_in)
        w = jax.random.uniform(kw, (fan_in, fan_out), jnp.float32, -bound, bound)
        b = jax.random.uniform(kb, (1, fan_out), jnp.float32, -bound, bound)
        return w, b

    w1, b1 = linear(ks[0], ks[1], input_dim, hidden_size)
    w2, b2 = linear(ks[2], ks[3], hidden_size, hidden_size)
    w3, b3 = linear(ks[4], ks[5], hidden_size, out_dim)
    return (w1, b1, w2, b2, w3, b3)


def reference_forward(state, action, params):
    w1, b1, w2, b2, w3, b3 = params
    x = jnp.concatenate([state, action], axis=1)
    h1 = jnp.maximum(x @ w1 + b1, 0.0)
    h2 = jnp.maximum(h1 @ w2 + b2, 0.0)
    out = h2 @ w3 + b3
    return out[:, : state.shape[1]], out[:, state.shape[1]:]


if __name__ == "__main__":
    key = jax.random.PRNGKey(0)
    k_state, k_action, k_params = jax.random.split(key, 3)

    batch = 64
    state_dim = 8
    action_dim = 4
    hidden_size = 32

    state = jax.random.normal(k_state, (batch, state_dim), jnp.float32)
    action = jax.random.normal(k_action, (batch, action_dim), jnp.float32)
    params = init_params(k_params, state_dim, action_dim, hidden_size)

    ref_ns, ref_r = reference_forward(state, action, params)

    # f32 run, small batch tile (exercises the batch-tiled pipeline: grid = 4).
    next_state_pred, reward_pred = transition_model_forward(
        state, action, params, tile_b=16, compute_dtype=jnp.float32)
    jax.block_until_ready((next_state_pred, reward_pred))

    assert next_state_pred.shape == (batch, state_dim)
    assert reward_pred.shape == (batch, 1)
    assert jnp.allclose(next_state_pred, ref_ns, atol=1e-5, rtol=1e-5)
    assert jnp.allclose(reward_pred, ref_r, atol=1e-5, rtol=1e-5)

    # bf16-operand run (f32 accumulation) — the v6e/v7x fast path; looser tolerance.
    ns_bf16, r_bf16 = transition_model_forward(
        state, action, params, tile_b=64, compute_dtype=jnp.bfloat16)
    jax.block_until_ready((ns_bf16, r_bf16))
    assert jnp.allclose(ns_bf16, ref_ns, atol=1e-1, rtol=1e-1)
    assert jnp.allclose(r_bf16, ref_r, atol=1e-1, rtol=1e-1)

    print("KERNEL_OK")
</pallas_src>

<mosaic_0001>
module attributes {stable_mosaic.version = 11 : i64} {
  func.func @transition_mlp_kernel(%arg0: i32, %arg1: memref<16x8xf32, #tpu.memory_space<vmem>>, %arg2: memref<16x4xf32, #tpu.memory_space<vmem>>, %arg3: memref<8x32xf32, #tpu.memory_space<vmem>>, %arg4: memref<4x32xf32, #tpu.memory_space<vmem>>, %arg5: memref<1x32xf32, #tpu.memory_space<vmem>>, %arg6: memref<32x32xf32, #tpu.memory_space<vmem>>, %arg7: memref<1x32xf32, #tpu.memory_space<vmem>>, %arg8: memref<32x128xf32, #tpu.memory_space<vmem>>, %arg9: memref<1x128xf32, #tpu.memory_space<vmem>>, %arg10: memref<16x128xf32, #tpu.memory_space<vmem>>) attributes {dimension_semantics = [#tpu.dimension_semantics<parallel>], iteration_bounds = array<i64: 4>, scalar_prefetch = 0 : i64, scratch_operands = 0 : i64, tpu.core_type = #tpu.core_type<tc>, window_params = [{transform_indices = @transform_0, window_bounds = array<i64: 16, 8>}, {transform_indices = @transform_1, window_bounds = array<i64: 16, 4>}, {pipeline_mode = #tpu.pipeline_mode<synchronous>, transform_indices = @transform_2, window_bounds = array<i64: 8, 32>}, {pipeline_mode = #tpu.pipeline_mode<synchronous>, transform_indices = @transform_3, window_bounds = array<i64: 4, 32>}, {pipeline_mode = #tpu.pipeline_mode<synchronous>, transform_indices = @transform_4, window_bounds = array<i64: 1, 32>}, {pipeline_mode = #tpu.pipeline_mode<synchronous>, transform_indices = @transform_5, window_bounds = array<i64: 32, 32>}, {pipeline_mode = #tpu.pipeline_mode<synchronous>, transform_indices = @transform_6, window_bounds = array<i64: 1, 32>}, {pipeline_mode = #tpu.pipeline_mode<synchronous>, transform_indices = @transform_7, window_bounds = array<i64: 32, 128>}, {pipeline_mode = #tpu.pipeline_mode<synchronous>, transform_indices = @transform_8, window_bounds = array<i64: 1, 128>}, {transform_indices = @transform_9, window_bounds = array<i64: 16, 128>}]} {
    %c0 = arith.constant 0 : index
    %c0_0 = arith.constant 0 : index
    %0 = vector.load %arg1[%c0, %c0_0] : memref<16x8xf32, #tpu.memory_space<vmem>>, vector<16x8xf32>
    %c0_1 = arith.constant 0 : index
    %c0_2 = arith.constant 0 : index
    %1 = vector.load %arg3[%c0_1, %c0_2] : memref<8x32xf32, #tpu.memory_space<vmem>>, vector<8x32xf32>
    %cst = arith.constant dense<0.000000e+00> : vector<16x32xf32>
    %2 = tpu.matmul %0, %1, %cst {dimension_numbers = #tpu.dot_dimension_numbers<[1], [0], [0], [1], [0, 0, 1, 1], [], []>} : vector<16x8xf32>, vector<8x32xf32>, vector<16x32xf32> -> vector<16x32xf32>
    %c0_3 = arith.constant 0 : index
    %c0_4 = arith.constant 0 : index
    %3 = vector.load %arg2[%c0_3, %c0_4] : memref<16x4xf32, #tpu.memory_space<vmem>>, vector<16x4xf32>
    %c0_5 = arith.constant 0 : index
    %c0_6 = arith.constant 0 : index
    %4 = vector.load %arg4[%c0_5, %c0_6] : memref<4x32xf32, #tpu.memory_space<vmem>>, vector<4x32xf32>
    %cst_7 = arith.constant dense<0.000000e+00> : vector<16x32xf32>
    %5 = tpu.matmul %3, %4, %cst_7 {dimension_numbers = #tpu.dot_dimension_numbers<[1], [0], [0], [1], [0, 0, 1, 1], [], []>} : vector<16x4xf32>, vector<4x32xf32>, vector<16x32xf32> -> vector<16x32xf32>
    %6 = arith.addf %2, %5 : vector<16x32xf32>
    %c0_8 = arith.constant 0 : index
    %c0_9 = arith.constant 0 : index
    %7 = vector.load %arg5[%c0_8, %c0_9] : memref<1x32xf32, #tpu.memory_space<vmem>>, vector<1x32xf32>
    %8 = vector.broadcast %7 : vector<1x32xf32> to vector<16x32xf32>
    %9 = arith.addf %6, %8 : vector<16x32xf32>
    %cst_10 = arith.constant 0.000000e+00 : f32
    %10 = vector.broadcast %cst_10 : f32 to vector<16x32xf32>
    %11 = arith.maximumf %9, %10 : vector<16x32xf32>
    %c0_11 = arith.constant 0 : index
    %c0_12 = arith.constant 0 : index
    %12 = vector.load %arg6[%c0_11, %c0_12] : memref<32x32xf32, #tpu.memory_space<vmem>>, vector<32x32xf32>
    %cst_13 = arith.constant dense<0.000000e+00> : vector<16x32xf32>
    %13 = tpu.matmul %11, %12, %cst_13 {dimension_numbers = #tpu.dot_dimension_numbers<[1], [0], [0], [1], [0, 0, 1, 1], [], []>} : vector<16x32xf32>, vector<32x32xf32>, vector<16x32xf32> -> vector<16x32xf32>
    %c0_14 = arith.constant 0 : index
    %c0_15 = arith.constant 0 : index
    %14 = vector.load %arg7[%c0_14, %c0_15] : memref<1x32xf32, #tpu.memory_space<vmem>>, vector<1x32xf32>
    %15 = vector.broadcast %14 : vector<1x32xf32> to vector<16x32xf32>
    %16 = arith.addf %13, %15 : vector<16x32xf32>
    %cst_16 = arith.constant 0.000000e+00 : f32
    %17 = vector.broadcast %cst_16 : f32 to vector<16x32xf32>
    %18 = arith.maximumf %16, %17 : vector<16x32xf32>
    %c0_17 = arith.constant 0 : index
    %c0_18 = arith.constant 0 : index
    %19 = vector.load %arg8[%c0_17, %c0_18] : memref<32x128xf32, #tpu.memory_space<vmem>>, vector<32x128xf32>
    %cst_19 = arith.constant dense<0.000000e+00> : vector<16x128xf32>
    %20 = tpu.matmul %18, %19, %cst_19 {dimension_numbers = #tpu.dot_dimension_numbers<[1], [0], [0], [1], [0, 0, 1, 1], [], []>} : vector<16x32xf32>, vector<32x128xf32>, vector<16x128xf32> -> vector<16x128xf32>
    %c0_20 = arith.constant 0 : index
    %c0_21 = arith.constant 0 : index
    %21 = vector.load %arg9[%c0_20, %c0_21] : memref<1x128xf32, #tpu.memory_space<vmem>>, vector<1x128xf32>
    %22 = vector.broadcast %21 : vector<1x128xf32> to vector<16x128xf32>
    %23 = arith.addf %20, %22 : vector<16x128xf32>
    %c0_22 = arith.constant 0 : index
    %c0_23 = arith.constant 0 : index
    %24 = vector.load %arg10[%c0_22, %c0_23] : memref<16x128xf32, #tpu.memory_space<vmem>>, vector<16x128xf32>
    tpu.vector_store %arg10[%c0_22, %c0_23], %23 {strides = array<i32>} : memref<16x128xf32, #tpu.memory_space<vmem>>, vector<16x128xf32>,
    return
  }
  func.func @transform_0(%arg0: i32) -> (i32, i32) {
    %c0_i32 = arith.constant 0 : i32
    %c0_i32_0 = arith.constant 0 : i32
    return %arg0, %c0_i32 : i32, i32
  }
  func.func @transform_1(%arg0: i32) -> (i32, i32) {
    %c0_i32 = arith.constant 0 : i32
    %c0_i32_0 = arith.constant 0 : i32
    return %arg0, %c0_i32 : i32, i32
  }
  func.func @transform_2(%arg0: i32) -> (i32, i32) {
    %c0_i32 = arith.constant 0 : i32
    %c0_i32_0 = arith.constant 0 : i32
    %c0_i32_1 = arith.constant 0 : i32
    return %c0_i32, %c0_i32_0 : i32, i32
  }
  func.func @transform_3(%arg0: i32) -> (i32, i32) {
    %c0_i32 = arith.constant 0 : i32
    %c0_i32_0 = arith.constant 0 : i32
    %c0_i32_1 = arith.constant 0 : i32
    return %c0_i32, %c0_i32_0 : i32, i32
  }
  func.func @transform_4(%arg0: i32) -> (i32, i32) {
    %c0_i32 = arith.constant 0 : i32
    %c0_i32_0 = arith.constant 0 : i32
    %c0_i32_1 = arith.constant 0 : i32
    return %c0_i32, %c0_i32_0 : i32, i32
  }
  func.func @transform_5(%arg0: i32) -> (i32, i32) {
    %c0_i32 = arith.constant 0 : i32
    %c0_i32_0 = arith.constant 0 : i32
    %c0_i32_1 = arith.constant 0 : i32
    return %c0_i32, %c0_i32_0 : i32, i32
  }
  func.func @transform_6(%arg0: i32) -> (i32, i32) {
    %c0_i32 = arith.constant 0 : i32
    %c0_i32_0 = arith.constant 0 : i32
    %c0_i32_1 = arith.constant 0 : i32
    return %c0_i32, %c0_i32_0 : i32, i32
  }
  func.func @transform_7(%arg0: i32) -> (i32, i32) {
    %c0_i32 = arith.constant 0 : i32
    %c0_i32_0 = arith.constant 0 : i32
    %c0_i32_1 = arith.constant 0 : i32
    return %c0_i32, %c0_i32_0 : i32, i32
  }
  func.func @transform_8(%arg0: i32) -> (i32, i32) {
    %c0_i32 = arith.constant 0 : i32
    %c0_i32_0 = arith.constant 0 : i32
    %c0_i32_1 = arith.constant 0 : i32
    return %c0_i32, %c0_i32_0 : i32, i32
  }
  func.func @transform_9(%arg0: i32) -> (i32, i32) {
    %c0_i32 = arith.constant 0 : i32
    %c0_i32_0 = arith.constant 0 : i32
    return %arg0, %c0_i32 : i32, i32
  }
}

</mosaic_0001>

<bundles_post_ra>
// kernel: transition_model_forward.1
= control target key start
LH: loop header
LB: loop body
LE: loop exit
PB: predicated region body
PF: predicated region fallthrough
CT: control target
= control target key end

     0   :  { %s674_s30 = smov 0   ;;  %s742_s0 = inlined_call_operand.vmem [shape: f32[64,8], index: 0, kind: input, shape index: {}]   ;;  %s743_s1 = inlined_call_operand.vmem [shape: f32[64,4], index: 1, kind: input, shape index: {}]   ;;  %s744_s2 = inlined_call_operand.vmem [shape: f32[8,32], index: 2, kind: input, shape index: {}]   ;;  %s745_s3 = inlined_call_operand.vmem [shape: f32[4,32], index: 3, kind: input, shape index: {}]   ;;  %s746_s4 = inlined_call_operand.vmem [shape: f32[1,32], index: 4, kind: input, shape index: {}]   ;;  %s747_s5 = inlined_call_operand.vmem [shape: f32[32,32], index: 5, kind: input, shape index: {}]   ;;  %s748_s6 = inlined_call_operand.vmem [shape: f32[1,32], index: 6, kind: input, shape index: {}]   ;;  %s749_s7 = inlined_call_operand.vmem [shape: f32[32,128], index: 7, kind: input, shape index: {}]   ;;  %s750_s8 = inlined_call_operand.vmem [shape: f32[1,128], index: 8, kind: input, shape index: {}]   ;;  %s751_s9 = inlined_call_operand.vmem [shape: f32[64,128], index: 9, kind: output, shape index: {}]  }
   0x1 LB: > { %s583_s10 = sadd.s32 4294967295, %s622_s30   ;;  %p587_p0 = scmp.ge.s32.totalorder %s622_s30, 1  ;;  %s622_s30 = sphi %s674_s30, %s19_s30  }
   0x2   : > { %p299_p1 = scmp.lt.s32.totalorder %s622_s30, 5 }
   0x4   : > { %p300_p2 = pnand %p587_p0, %p299_p1 }
   0x5   : > { %s588_s15 = sshll.u32 (!%p300_p2), %s583_s10, 1 }
   0x6   : > { %303 = sbr.rel (%p300_p2) target bundleno = 427 (0x1ab), region = 56  ;;  %p341_p3 = scmp.lt.s32.totalorder (!%p300_p2), %s588_s15, 7 }
   0xb   : > { %v363_v0 = vld [vmem:[%s745_s3] sm:$0xf]  ;;  %vm371_vm0 = vcmask 1043456   ;;  %s753_s15 = smov (!%p341_p3, %s588_s15), 7  ;;  %vm364_vm1 = vcmask 31744   ;;  %vm398_vm2 = vcmask 64512  }
   0xc   : > { %v360_v1 = vld [vmem:[%s744_s2] sm:$0xff]  ;;  %594 = vmatpush.msk.msra.mxu0 %vm371_vm0, %v363_v0  ;;  %s688_s16 = sshll.u32 %s753_s15, 3  ;;  %v439_v6 = vld [vmem:[%s747_s5 + $0x18] sm:$0xff]  ;;  %v438_v7 = vld [vmem:[%s747_s5 + $0x10] sm:$0xff]  ;;  %vm444_vm3 = vcmask 261120  }
   0xd   : > { %420 = vmatpush.msra.mxu1 %v360_v1  ;;  %s350_s19 = scalar_lea.vmem %s743_s1, %s688_s16  ;;  %s344_s22 = scalar_lea.vmem %s742_s0, %s688_s16  ;;  %463 = vmatpush.msra.mxu2 %v439_v6  ;;  %v437_v8 = vld [vmem:[%s747_s5 + $0x8] sm:$0xff]  ;;  %v436_v9 = vld [vmem:[%s747_s5] sm:$0xff]  ;;  %v479_v10 = vld [vmem:[%s749_s7 + $0x18] sm:$0xff] }
   0xe   : > { %v361_v2 = vld [vmem:[%s350_s19] sm:$0xff]  ;;  %v362_v4 = vld [vmem:[%s350_s19 + $0x8] sm:$0xff]  ;;  %502 = vmatpush.msra.mxu3 %v479_v10  ;;  %v478_v22 = vld [vmem:[%s749_s7 + $0x10] sm:$0xff]  ;;  %s356_s28 = scalar_lea.vmem %s751_s9, %s688_s16 }
   0xf   : > { %v358_v3 = vld [vmem:[%s344_s22] sm:$0xff]  ;;  %595 = vmatmul.msk.f32.vlgmr.msra.gmra.mxu0 %vm364_vm1, %v361_v2  ;;  %v359_v5 = vld [vmem:[%s344_s22 + $0x8] sm:$0xff]  ;;  %464 = vmatpush.msra.mxu2 %v438_v7 }
  0x10   : > { %597 = vmatmul.msk.f32.vlgmr.msra.gmra.mxu1 %vm398_vm2, %v358_v3  ;;  %v613_v11 = vld [vmem:[%s746_s4] ss:$0 sm:$0xff]  ;;  %503 = vmatpush.msra.mxu3 %v478_v22  ;;  %v477_v23 = vld [vmem:[%s749_s7 + $0x8] sm:$0xff] }
  0x11   : > { %465 = vmatpush.msra.mxu2 %v437_v8  ;;  %v476_v24 = vld [vmem:[%s749_s7] sm:$0xff] }
  0x12   : > { %504 = vmatpush.msra.mxu3 %v477_v23  ;;  %v614_v25 = vld [vmem:[%s748_s6] ss:$0 sm:$0xff] }
  0x13   : > { %466 = vmatpush.msra.mxu2 %v436_v9  ;;  %v615_v32 = vld [vmem:[%s750_s8] ss:$0 sm:$0xff] }
  0x14   : > { %505 = vmatpush.msra.mxu3 %v476_v24 }
  0x17   : > { %596 = vmatmul.msk.f32.gmra.mxu0 %vm364_vm1, %v362_v4 }
  0x18   : > { %598 = vmatmul.msk.f32.gmra.mxu1 %vm398_vm2, %v359_v5 }
  0x8c   : > { %v392_v12 = vpop.f32.mrf.mxu0 }
  0x8d   : > { %v422_v13 = vpop.f32.mrf.mxu1 }
  0x8e   : > { %v423_v14 = vadd.f32 %v422_v13, %v392_v12 }
  0x90   : > { %v432_v15 = vadd.f32 %v613_v11, %v423_v14 }
  0x92   : > { %v434_v16 = vmax.f32 %v432_v15, 0.0 }
  0x94   : > { %599 = vmatmul.msk.f32.vlgmr.msra.gmra.mxu2 %vm444_vm3, %v434_v16  ;;  %v395_v17 = vpop.f32.mrf.mxu0 }
  0x95   : > { %v425_v18 = vpop.f32.mrf.mxu1 }
  0x96   : > { %v426_v19 = vadd.f32 %v425_v18, %v395_v17 }
  0x98   : > { %v433_v20 = vadd.f32 %v613_v11, %v426_v19 }
  0x9a   : > { %v435_v21 = vmax.f32 %v433_v20, 0.0 }
  0x9c   : > { %600 = vmatmul.msk.f32.gmra.mxu2 %vm444_vm3, %v435_v21 }
 0x117   : > { %v468_v26 = vpop.f32.mrf.mxu2 }
 0x118   : > { %v469_v27 = vadd.f32 %v614_v25, %v468_v26 }
 0x11a   : > { %v474_v28 = vmax.f32 %v469_v27, 0.0 }
 0x11c   : > { %601 = vmatmul.msk.f32.vlgmr.msra.gmra.mxu3 %vm444_vm3, %v474_v28 }
 0x11f   : > { %v471_v29 = vpop.f32.mrf.mxu2 }
 0x120   : > { %v472_v30 = vadd.f32 %v614_v25, %v471_v29 }
 0x122   : > { %v475_v31 = vmax.f32 %v472_v30, 0.0 }
 0x124   : > { %602 = vmatmul.msk.f32.gmra.mxu3 %vm444_vm3, %v475_v31 }
 0x19f   : > { %v507_v33 = vpop.f32.mrf.mxu3 }
 0x1a0   : > { %v508_v34 = vadd.f32 %v615_v32, %v507_v33 }
 0x1a2   : > { %513 = vst [vmem:[%s356_s28] sm:$0xff] %v508_v34 }
 0x1a7   : > { %v510_v35 = vpop.f32.mrf.mxu3 }
 0x1a8   : > { %v511_v36 = vadd.f32 %v615_v32, %v510_v35 }
 0x1aa   : > { %514 = vst [vmem:[%s356_s28 + $0x8] sm:$0xff] %v511_v36 }
 0x1ab PF: > { %s19_s30 = sadd.s32 1, %s622_s30  }
 0x1ac   : > { %p16_p4 = scmp.ge.s32.totalorder %s19_s30, 6  }
 0x1ae   :  { %18 = sbr.rel (!%p16_p4) target bundleno = 1 (0x1), region = 89 }

</bundles_post_ra>
